<compile_context>
chip_gen: v5e
topology: v5e:2x2
jax: 0.10.0
libtpu: 0.0.40
codegen_flags: <defaults>
</compile_context>

<pallas_src>
import functools

import jax
import jax.numpy as jnp
from jax.experimental import pallas as pl
from jax.experimental.pallas import tpu as pltpu

_LANE = 128


def _cubical_kernel(xr_ref, m_ref, psum_ref, cvec_ref, bvec_ref, ovec_ref,
                    ob_ref, o_ref, *, group_size, threshold,
                    threshold_prediction, compute_dtype, epilogue_dtype):
    # Interleaved x tile: lane l of row r holds feature (l % d) of batch
    # element r*P + l//d.  One MXU matmul against the block-diagonal shared^T
    # matrix puts, at lane j*d + k, the shared projection s_k of that element.
    xr = xr_ref[...].astype(compute_dtype)
    y = jnp.dot(xr, m_ref[...], preferred_element_type=jnp.float32)   # (R,128)
    y = y.astype(epilogue_dtype)

    cvec = cvec_ref[...]          # (group_size, 128) per-lane coeff
    bvec = bvec_ref[...]          # (group_size, 128) per-lane bias
    ovec = ovec_ref[...]          # (group_size, 128) per-lane output weight

    # Hidden layer + Hardtanh(0,1) + output-weight scaling, one group member
    # per iteration (static unroll; group_size = N // d is small).
    acc = jnp.zeros(y.shape, jnp.float32)
    for g in range(group_size):
        h = jnp.clip(cvec[g:g + 1] * y + bvec[g:g + 1], 0.0, 1.0)
        acc = acc + (ovec[g:g + 1] * h).astype(jnp.float32)

    # Sum the d lanes of each batch element with a tiny 0/1 matmul; result
    # rows are already in batch order (free reshape to (B,1) in the wrapper).
    out = jnp.dot(acc, psum_ref[...], preferred_element_type=jnp.float32)
    out = out + ob_ref[...]
    if threshold_prediction:
        out = jnp.clip(out, 0.0, threshold)
    o_ref[...] = out.astype(o_ref.dtype)


def cubical_forward(x, shared_weight_matrix, weight_coefficients, bias,
                    out_w, out_b, *, group_size, threshold,
                    threshold_prediction, block_b=32768,
                    compute_dtype=jnp.bfloat16,
                    epilogue_dtype=jnp.float32):
    """Forward pass matching the PyTorch module semantics.

    x:                      (B, d) float32
    shared_weight_matrix:   (d, d)
    weight_coefficients:    (N,)
    bias:                   (N,)
    out_w:                  (1, N)   (torch nn.Linear weight layout)
    out_b:                  (1,)

    block_b:        target batch elements per grid step (~32K default).
    compute_dtype:  streaming dtype for the MXU matmul (f32 for strict math).
    epilogue_dtype: dtype of the per-hidden-unit elementwise chain
                    (bf16 recommended on v6e/v7x, keep f32 on v5e).
    """
    B, d = x.shape
    N = bias.shape[0]
    assert N == d * group_size, "N must equal dimension * group_size"
    if _LANE % d != 0:
        # TODO(synk): d that does not divide 128 needs a different lane packing;
        # the shipped config uses d=4.
        raise NotImplementedError("config.dimension must divide 128")
    P = _LANE // d                                    # batch elements per row

    # ---- tiny resident parameter tensors (one-off, negligible) -----------
    M = jnp.kron(jnp.eye(P, dtype=jnp.float32),
                 shared_weight_matrix.astype(jnp.float32).T
                 ).astype(compute_dtype)              # (128, 128) block-diag
    lane = jnp.arange(_LANE)
    lane_k = lane % d                                 # group index per lane
    lane_j = lane // d                                # batch-within-row per lane
    hid = lane_k[None, :] * group_size + jnp.arange(group_size)[:, None]
    cvec = weight_coefficients.astype(jnp.float32)[hid].astype(epilogue_dtype)
    bvec = bias.astype(jnp.float32)[hid].astype(epilogue_dtype)
    ovec = out_w.reshape(-1).astype(jnp.float32)[hid].astype(epilogue_dtype)
    psum = (lane_j[:, None] == jnp.arange(P)[None, :]).astype(jnp.float32)
    ob = out_b.reshape(1, 1).astype(jnp.float32)

    # ---- batch layout: free (B,d) -> (B//P, 128) reshape ------------------
    Bp = ((B + P - 1) // P) * P
    if Bp != B:                                       # only for ragged B % P
        x = jnp.pad(x, ((0, Bp - B), (0, 0)))
    xr = x.astype(jnp.float32).reshape(Bp // P, _LANE)
    R_total = Bp // P

    # ---- tile selection ----------------------------------------------------
    r_target = max(1, int(block_b) // P)
    r_blk = min(r_target, R_total)
    if R_total >= 16:                     # >=2 grid steps so megacore can split
        r_blk = min(r_blk, (R_total + 1) // 2)
    if r_blk < R_total:
        r_blk = max(8, ((r_blk + 7) // 8) * 8)        # sublane-aligned tiles
        if r_blk >= R_total:
            r_blk = R_total
    n_tiles = (R_total + r_blk - 1) // r_blk

    kernel = functools.partial(
        _cubical_kernel,
        group_size=int(group_size),
        threshold=float(threshold),
        threshold_prediction=bool(threshold_prediction),
        compute_dtype=compute_dtype,
        epilogue_dtype=epilogue_dtype,
    )

    out = pl.pallas_call(
        kernel,
        out_shape=jax.ShapeDtypeStruct((R_total, P), jnp.float32),
        grid=(n_tiles,),
        in_specs=[
            pl.BlockSpec((r_blk, _LANE), lambda i: (i, 0)),       # x tiles
            pl.BlockSpec((_LANE, _LANE), lambda i: (0, 0)),       # M (resident)
            pl.BlockSpec((_LANE, P), lambda i: (0, 0)),           # lane-sum mat
            pl.BlockSpec((group_size, _LANE), lambda i: (0, 0)),  # coeff lanes
            pl.BlockSpec((group_size, _LANE), lambda i: (0, 0)),  # bias lanes
            pl.BlockSpec((group_size, _LANE), lambda i: (0, 0)),  # out-w lanes
            pl.BlockSpec((1, 1), lambda i: (0, 0)),               # out bias
        ],
        out_specs=pl.BlockSpec((r_blk, P), lambda i: (i, 0)),
        compiler_params=pltpu.CompilerParams(
            dimension_semantics=("parallel",),
            vmem_limit_bytes=32 * 1024 * 1024),
    )(xr, M, psum, cvec, bvec, ovec, ob)

    out = out.reshape(Bp, 1)                          # free, already batch order
    return out if Bp == B else out[:B]


def reference_forward(x, shared_weight_matrix, weight_coefficients, bias,
                      out_w, out_b, *, group_size, threshold,
                      threshold_prediction):
    unscaled = jnp.repeat(shared_weight_matrix, group_size, axis=0)
    weight_matrix = unscaled * weight_coefficients[:, None]
    h = x @ weight_matrix.T + bias
    h = jnp.clip(h, 0.0, 1.0)
    out = h @ out_w.T + out_b
    if threshold_prediction:
        out = jnp.clip(out, 0.0, threshold)
    return out


if __name__ == "__main__":
    # Small, deterministic synthetic configuration mirroring the module.
    d = 4                 # config.dimension
    N = 32                # hidden width (must be multiple of d)
    group_size = N // d
    batch = 8
    num_labels = 5
    threshold = float(num_labels - 1)
    threshold_prediction = True
    data_bounds = [(0.0, 1.0)] * d

    key = jax.random.PRNGKey(0)
    k_x, k_w, k_c, k_b, k_ow, k_ob, k_x2, k_x3 = jax.random.split(key, 8)

    shared_weight_matrix = jnp.eye(d, dtype=jnp.float32) \
        + 0.01 * jax.random.normal(k_w, (d, d), dtype=jnp.float32)
    weight_coefficients = jnp.ones((N,), dtype=jnp.float32) \
        + 0.01 * jax.random.normal(k_c, (N,), dtype=jnp.float32)

    lower = jnp.concatenate(
        [jnp.full((group_size,), data_bounds[i][0]) for i in range(d)]
    ).astype(jnp.float32)
    upper = jnp.concatenate(
        [jnp.full((group_size,), data_bounds[i][1]) for i in range(d)]
    ).astype(jnp.float32)
    bias = jax.random.uniform(k_b, (N,), dtype=jnp.float32) * (lower - upper) - lower

    out_w = 0.1 * jax.random.normal(k_ow, (1, N), dtype=jnp.float32)
    out_b = 0.1 * jax.random.normal(k_ob, (1,), dtype=jnp.float32)

    params = dict(group_size=group_size, threshold=threshold,
                  threshold_prediction=threshold_prediction)

    # --- test 1: small batch, strict f32 path (tight check) ----------------
    x = jax.random.normal(k_x, (batch, d), dtype=jnp.float32)
    y_ref = reference_forward(x, shared_weight_matrix, weight_coefficients,
                              bias, out_w, out_b, **params)
    y32 = jax.block_until_ready(
        cubical_forward(x, shared_weight_matrix, weight_coefficients, bias,
                        out_w, out_b, compute_dtype=jnp.float32, **params))
    assert y32.shape == (batch, 1)
    assert jnp.allclose(y32, y_ref, atol=1e-4, rtol=1e-4)

    # --- default bf16 streaming path (loose check vs f32 reference) --------
    y16 = jax.block_until_ready(
        cubical_forward(x, shared_weight_matrix, weight_coefficients, bias,
                        out_w, out_b, **params))
    assert y16.shape == (batch, 1)
    assert jnp.allclose(y16, y_ref, atol=1e-1, rtol=1e-1)

    # --- test 2: multi-tile grid + ragged batch (pad + masked tail) --------
    batch2 = 300
    x2 = jax.random.normal(k_x2, (batch2, d), dtype=jnp.float32)
    y2_ref = reference_forward(x2, shared_weight_matrix, weight_coefficients,
                               bias, out_w, out_b, **params)
    y2 = jax.block_until_ready(
        cubical_forward(x2, shared_weight_matrix, weight_coefficients, bias,
                        out_w, out_b, compute_dtype=jnp.float32,
                        block_b=128, **params))
    assert y2.shape == (batch2, 1)
    assert jnp.allclose(y2, y2_ref, atol=1e-4, rtol=1e-4)

    # --- test 3: larger aligned batch, default tiles, bf16 epilogue --------
    batch3 = 1024
    x3 = jax.random.normal(k_x3, (batch3, d), dtype=jnp.float32)
    y3_ref = reference_forward(x3, shared_weight_matrix, weight_coefficients,
                               bias, out_w, out_b, **params)
    y3 = jax.block_until_ready(
        cubical_forward(x3, shared_weight_matrix, weight_coefficients, bias,
                        out_w, out_b, **params))
    assert y3.shape == (batch3, 1)
    assert jnp.allclose(y3, y3_ref, atol=1e-1, rtol=1e-1)

    y3b = jax.block_until_ready(
        cubical_forward(x3, shared_weight_matrix, weight_coefficients, bias,
                        out_w, out_b, epilogue_dtype=jnp.bfloat16, **params))
    assert y3b.shape == (batch3, 1)
    assert jnp.allclose(y3b, y3_ref, atol=2e-1, rtol=2e-1)

    print("KERNEL_OK")
</pallas_src>

<mosaic_0001>
module attributes {stable_mosaic.version = 11 : i64} {
  func.func @_cubical_kernel(%arg0: i32, %arg1: memref<1x128xf32, #tpu.memory_space<vmem>>, %arg2: memref<128x128xf32, #tpu.memory_space<vmem>>, %arg3: memref<128x32xf32, #tpu.memory_space<vmem>>, %arg4: memref<8x128xf32, #tpu.memory_space<vmem>>, %arg5: memref<8x128xf32, #tpu.memory_space<vmem>>, %arg6: memref<8x128xf32, #tpu.memory_space<vmem>>, %arg7: memref<1x1xf32, #tpu.memory_space<vmem>>, %arg8: memref<1x32xf32, #tpu.memory_space<vmem>>) attributes {dimension_semantics = [#tpu.dimension_semantics<parallel>], iteration_bounds = array<i64: 1>, scalar_prefetch = 0 : i64, scratch_operands = 0 : i64, tpu.core_type = #tpu.core_type<tc>, window_params = [{transform_indices = @transform_0, window_bounds = array<i64: 1, 128>}, {pipeline_mode = #tpu.pipeline_mode<synchronous>, transform_indices = @transform_1, window_bounds = array<i64: 128, 128>}, {pipeline_mode = #tpu.pipeline_mode<synchronous>, transform_indices = @transform_2, window_bounds = array<i64: 128, 32>}, {pipeline_mode = #tpu.pipeline_mode<synchronous>, transform_indices = @transform_3, window_bounds = array<i64: 8, 128>}, {pipeline_mode = #tpu.pipeline_mode<synchronous>, transform_indices = @transform_4, window_bounds = array<i64: 8, 128>}, {pipeline_mode = #tpu.pipeline_mode<synchronous>, transform_indices = @transform_5, window_bounds = array<i64: 8, 128>}, {pipeline_mode = #tpu.pipeline_mode<synchronous>, transform_indices = @transform_6, window_bounds = array<i64: 1, 1>}, {transform_indices = @transform_7, window_bounds = array<i64: 1, 32>}]} {
    %c0 = arith.constant 0 : index
    %c0_0 = arith.constant 0 : index
    %0 = vector.load %arg1[%c0, %c0_0] : memref<1x128xf32, #tpu.memory_space<vmem>>, vector<1x128xf32>
    %c0_1 = arith.constant 0 : index
    %c0_2 = arith.constant 0 : index
    %1 = vector.load %arg2[%c0_1, %c0_2] : memref<128x128xf32, #tpu.memory_space<vmem>>, vector<128x128xf32>
    %cst = arith.constant dense<0.000000e+00> : vector<1x128xf32>
    %2 = tpu.matmul %0, %1, %cst {dimension_numbers = #tpu.dot_dimension_numbers<[1], [0], [0], [1], [0, 0, 1, 1], [], []>} : vector<1x128xf32>, vector<128x128xf32>, vector<1x128xf32> -> vector<1x128xf32>
    %c0_3 = arith.constant 0 : index
    %c0_4 = arith.constant 0 : index
    %3 = vector.load %arg4[%c0_3, %c0_4] : memref<8x128xf32, #tpu.memory_space<vmem>>, vector<8x128xf32>
    %c0_5 = arith.constant 0 : index
    %c0_6 = arith.constant 0 : index
    %4 = vector.load %arg5[%c0_5, %c0_6] : memref<8x128xf32, #tpu.memory_space<vmem>>, vector<8x128xf32>
    %c0_7 = arith.constant 0 : index
    %c0_8 = arith.constant 0 : index
    %5 = vector.load %arg6[%c0_7, %c0_8] : memref<8x128xf32, #tpu.memory_space<vmem>>, vector<8x128xf32>
    %cst_9 = arith.constant 0.000000e+00 : f32
    %6 = vector.broadcast %cst_9 : f32 to vector<1x128xf32>
    %7 = vector.extract_strided_slice %3 {offsets = [0, 0], sizes = [1, 128], strides = [1, 1]} : vector<8x128xf32> to vector<1x128xf32>
    %8 = arith.mulf %7, %2 : vector<1x128xf32>
    %9 = vector.extract_strided_slice %4 {offsets = [0, 0], sizes = [1, 128], strides = [1, 1]} : vector<8x128xf32> to vector<1x128xf32>
    %10 = arith.addf %8, %9 : vector<1x128xf32>
    %cst_10 = arith.constant 0.000000e+00 : f32
    %cst_11 = arith.constant 1.000000e+00 : f32
    %11 = vector.broadcast %cst_10 : f32 to vector<1x128xf32>
    %12 = arith.maximumf %11, %10 : vector<1x128xf32>
    %13 = vector.broadcast %cst_11 : f32 to vector<1x128xf32>
    %14 = arith.minimumf %13, %12 : vector<1x128xf32>
    %15 = vector.extract_strided_slice %5 {offsets = [0, 0], sizes = [1, 128], strides = [1, 1]} : vector<8x128xf32> to vector<1x128xf32>
    %16 = arith.mulf %15, %14 : vector<1x128xf32>
    %17 = arith.addf %6, %16 : vector<1x128xf32>
    %18 = vector.extract_strided_slice %3 {offsets = [1, 0], sizes = [1, 128], strides = [1, 1]} : vector<8x128xf32> to vector<1x128xf32>
    %19 = arith.mulf %18, %2 : vector<1x128xf32>
    %20 = vector.extract_strided_slice %4 {offsets = [1, 0], sizes = [1, 128], strides = [1, 1]} : vector<8x128xf32> to vector<1x128xf32>
    %21 = arith.addf %19, %20 : vector<1x128xf32>
    %cst_12 = arith.constant 0.000000e+00 : f32
    %cst_13 = arith.constant 1.000000e+00 : f32
    %22 = vector.broadcast %cst_12 : f32 to vector<1x128xf32>
    %23 = arith.maximumf %22, %21 : vector<1x128xf32>
    %24 = vector.broadcast %cst_13 : f32 to vector<1x128xf32>
    %25 = arith.minimumf %24, %23 : vector<1x128xf32>
    %26 = vector.extract_strided_slice %5 {offsets = [1, 0], sizes = [1, 128], strides = [1, 1]} : vector<8x128xf32> to vector<1x128xf32>
    %27 = arith.mulf %26, %25 : vector<1x128xf32>
    %28 = arith.addf %17, %27 : vector<1x128xf32>
    %29 = vector.extract_strided_slice %3 {offsets = [2, 0], sizes = [1, 128], strides = [1, 1]} : vector<8x128xf32> to vector<1x128xf32>
    %30 = arith.mulf %29, %2 : vector<1x128xf32>
    %31 = vector.extract_strided_slice %4 {offsets = [2, 0], sizes = [1, 128], strides = [1, 1]} : vector<8x128xf32> to vector<1x128xf32>
    %32 = arith.addf %30, %31 : vector<1x128xf32>
    %cst_14 = arith.constant 0.000000e+00 : f32
    %cst_15 = arith.constant 1.000000e+00 : f32
    %33 = vector.broadcast %cst_14 : f32 to vector<1x128xf32>
    %34 = arith.maximumf %33, %32 : vector<1x128xf32>
    %35 = vector.broadcast %cst_15 : f32 to vector<1x128xf32>
    %36 = arith.minimumf %35, %34 : vector<1x128xf32>
    %37 = vector.extract_strided_slice %5 {offsets = [2, 0], sizes = [1, 128], strides = [1, 1]} : vector<8x128xf32> to vector<1x128xf32>
    %38 = arith.mulf %37, %36 : vector<1x128xf32>
    %39 = arith.addf %28, %38 : vector<1x128xf32>
    %40 = vector.extract_strided_slice %3 {offsets = [3, 0], sizes = [1, 128], strides = [1, 1]} : vector<8x128xf32> to vector<1x128xf32>
    %41 = arith.mulf %40, %2 : vector<1x128xf32>
    %42 = vector.extract_strided_slice %4 {offsets = [3, 0], sizes = [1, 128], strides = [1, 1]} : vector<8x128xf32> to vector<1x128xf32>
    %43 = arith.addf %41, %42 : vector<1x128xf32>
    %cst_16 = arith.constant 0.000000e+00 : f32
    %cst_17 = arith.constant 1.000000e+00 : f32
    %44 = vector.broadcast %cst_16 : f32 to vector<1x128xf32>
    %45 = arith.maximumf %44, %43 : vector<1x128xf32>
    %46 = vector.broadcast %cst_17 : f32 to vector<1x128xf32>
    %47 = arith.minimumf %46, %45 : vector<1x128xf32>
    %48 = vector.extract_strided_slice %5 {offsets = [3, 0], sizes = [1, 128], strides = [1, 1]} : vector<8x128xf32> to vector<1x128xf32>
    %49 = arith.mulf %48, %47 : vector<1x128xf32>
    %50 = arith.addf %39, %49 : vector<1x128xf32>
    %51 = vector.extract_strided_slice %3 {offsets = [4, 0], sizes = [1, 128], strides = [1, 1]} : vector<8x128xf32> to vector<1x128xf32>
    %52 = arith.mulf %51, %2 : vector<1x128xf32>
    %53 = vector.extract_strided_slice %4 {offsets = [4, 0], sizes = [1, 128], strides = [1, 1]} : vector<8x128xf32> to vector<1x128xf32>
    %54 = arith.addf %52, %53 : vector<1x128xf32>
    %cst_18 = arith.constant 0.000000e+00 : f32
    %cst_19 = arith.constant 1.000000e+00 : f32
    %55 = vector.broadcast %cst_18 : f32 to vector<1x128xf32>
    %56 = arith.maximumf %55, %54 : vector<1x128xf32>
    %57 = vector.broadcast %cst_19 : f32 to vector<1x128xf32>
    %58 = arith.minimumf %57, %56 : vector<1x128xf32>
    %59 = vector.extract_strided_slice %5 {offsets = [4, 0], sizes = [1, 128], strides = [1, 1]} : vector<8x128xf32> to vector<1x128xf32>
    %60 = arith.mulf %59, %58 : vector<1x128xf32>
    %61 = arith.addf %50, %60 : vector<1x128xf32>
    %62 = vector.extract_strided_slice %3 {offsets = [5, 0], sizes = [1, 128], strides = [1, 1]} : vector<8x128xf32> to vector<1x128xf32>
    %63 = arith.mulf %62, %2 : vector<1x128xf32>
    %64 = vector.extract_strided_slice %4 {offsets = [5, 0], sizes = [1, 128], strides = [1, 1]} : vector<8x128xf32> to vector<1x128xf32>
    %65 = arith.addf %63, %64 : vector<1x128xf32>
    %cst_20 = arith.constant 0.000000e+00 : f32
    %cst_21 = arith.constant 1.000000e+00 : f32
    %66 = vector.broadcast %cst_20 : f32 to vector<1x128xf32>
    %67 = arith.maximumf %66, %65 : vector<1x128xf32>
    %68 = vector.broadcast %cst_21 : f32 to vector<1x128xf32>
    %69 = arith.minimumf %68, %67 : vector<1x128xf32>
    %70 = vector.extract_strided_slice %5 {offsets = [5, 0], sizes = [1, 128], strides = [1, 1]} : vector<8x128xf32> to vector<1x128xf32>
    %71 = arith.mulf %70, %69 : vector<1x128xf32>
    %72 = arith.addf %61, %71 : vector<1x128xf32>
    %73 = vector.extract_strided_slice %3 {offsets = [6, 0], sizes = [1, 128], strides = [1, 1]} : vector<8x128xf32> to vector<1x128xf32>
    %74 = arith.mulf %73, %2 : vector<1x128xf32>
    %75 = vector.extract_strided_slice %4 {offsets = [6, 0], sizes = [1, 128], strides = [1, 1]} : vector<8x128xf32> to vector<1x128xf32>
    %76 = arith.addf %74, %75 : vector<1x128xf32>
    %cst_22 = arith.constant 0.000000e+00 : f32
    %cst_23 = arith.constant 1.000000e+00 : f32
    %77 = vector.broadcast %cst_22 : f32 to vector<1x128xf32>
    %78 = arith.maximumf %77, %76 : vector<1x128xf32>
    %79 = vector.broadcast %cst_23 : f32 to vector<1x128xf32>
    %80 = arith.minimumf %79, %78 : vector<1x128xf32>
    %81 = vector.extract_strided_slice %5 {offsets = [6, 0], sizes = [1, 128], strides = [1, 1]} : vector<8x128xf32> to vector<1x128xf32>
    %82 = arith.mulf %81, %80 : vector<1x128xf32>
    %83 = arith.addf %72, %82 : vector<1x128xf32>
    %84 = vector.extract_strided_slice %3 {offsets = [7, 0], sizes = [1, 128], strides = [1, 1]} : vector<8x128xf32> to vector<1x128xf32>
    %85 = arith.mulf %84, %2 : vector<1x128xf32>
    %86 = vector.extract_strided_slice %4 {offsets = [7, 0], sizes = [1, 128], strides = [1, 1]} : vector<8x128xf32> to vector<1x128xf32>
    %87 = arith.addf %85, %86 : vector<1x128xf32>
    %cst_24 = arith.constant 0.000000e+00 : f32
    %cst_25 = arith.constant 1.000000e+00 : f32
    %88 = vector.broadcast %cst_24 : f32 to vector<1x128xf32>
    %89 = arith.maximumf %88, %87 : vector<1x128xf32>
    %90 = vector.broadcast %cst_25 : f32 to vector<1x128xf32>
    %91 = arith.minimumf %90, %89 : vector<1x128xf32>
    %92 = vector.extract_strided_slice %5 {offsets = [7, 0], sizes = [1, 128], strides = [1, 1]} : vector<8x128xf32> to vector<1x128xf32>
    %93 = arith.mulf %92, %91 : vector<1x128xf32>
    %94 = arith.addf %83, %93 : vector<1x128xf32>
    %c0_26 = arith.constant 0 : index
    %c0_27 = arith.constant 0 : index
    %95 = vector.load %arg3[%c0_26, %c0_27] : memref<128x32xf32, #tpu.memory_space<vmem>>, vector<128x32xf32>
    %cst_28 = arith.constant dense<0.000000e+00> : vector<1x32xf32>
    %96 = tpu.matmul %94, %95, %cst_28 {dimension_numbers = #tpu.dot_dimension_numbers<[1], [0], [0], [1], [0, 0, 1, 1], [], []>} : vector<1x128xf32>, vector<128x32xf32>, vector<1x32xf32> -> vector<1x32xf32>
    %c0_29 = arith.constant 0 : index
    %c0_30 = arith.constant 0 : index
    %97 = vector.load %arg7[%c0_29, %c0_30] : memref<1x1xf32, #tpu.memory_space<vmem>>, vector<1x1xf32>
    %98 = vector.broadcast %97 : vector<1x1xf32> to vector<1x32xf32>
    %99 = arith.addf %96, %98 : vector<1x32xf32>
    %cst_31 = arith.constant 0.000000e+00 : f32
    %cst_32 = arith.constant 4.000000e+00 : f32
    %100 = vector.broadcast %cst_31 : f32 to vector<1x32xf32>
    %101 = arith.maximumf %100, %99 : vector<1x32xf32>
    %102 = vector.broadcast %cst_32 : f32 to vector<1x32xf32>
    %103 = arith.minimumf %102, %101 : vector<1x32xf32>
    %c0_33 = arith.constant 0 : index
    %c0_34 = arith.constant 0 : index
    %104 = vector.load %arg8[%c0_33, %c0_34] : memref<1x32xf32, #tpu.memory_space<vmem>>, vector<1x32xf32>
    tpu.vector_store %arg8[%c0_33, %c0_34], %103 {strides = array<i32>} : memref<1x32xf32, #tpu.memory_space<vmem>>, vector<1x32xf32>,
    return
  }
  func.func @transform_0(%arg0: i32) -> (i32, i32) {
    %c0_i32 = arith.constant 0 : i32
    %c0_i32_0 = arith.constant 0 : i32
    return %arg0, %c0_i32 : i32, i32
  }
  func.func @transform_1(%arg0: i32) -> (i32, i32) {
    %c0_i32 = arith.constant 0 : i32
    %c0_i32_0 = arith.constant 0 : i32
    %c0_i32_1 = arith.constant 0 : i32
    return %c0_i32, %c0_i32_0 : i32, i32
  }
  func.func @transform_2(%arg0: i32) -> (i32, i32) {
    %c0_i32 = arith.constant 0 : i32
    %c0_i32_0 = arith.constant 0 : i32
    %c0_i32_1 = arith.constant 0 : i32
    return %c0_i32, %c0_i32_0 : i32, i32
  }
  func.func @transform_3(%arg0: i32) -> (i32, i32) {
    %c0_i32 = arith.constant 0 : i32
    %c0_i32_0 = arith.constant 0 : i32
    %c0_i32_1 = arith.constant 0 : i32
    return %c0_i32, %c0_i32_0 : i32, i32
  }
  func.func @transform_4(%arg0: i32) -> (i32, i32) {
    %c0_i32 = arith.constant 0 : i32
    %c0_i32_0 = arith.constant 0 : i32
    %c0_i32_1 = arith.constant 0 : i32
    return %c0_i32, %c0_i32_0 : i32, i32
  }
  func.func @transform_5(%arg0: i32) -> (i32, i32) {
    %c0_i32 = arith.constant 0 : i32
    %c0_i32_0 = arith.constant 0 : i32
    %c0_i32_1 = arith.constant 0 : i32
    return %c0_i32, %c0_i32_0 : i32, i32
  }
  func.func @transform_6(%arg0: i32) -> (i32, i32) {
    %c0_i32 = arith.constant 0 : i32
    %c0_i32_0 = arith.constant 0 : i32
    %c0_i32_1 = arith.constant 0 : i32
    return %c0_i32, %c0_i32_0 : i32, i32
  }
  func.func @transform_7(%arg0: i32) -> (i32, i32) {
    %c0_i32 = arith.constant 0 : i32
    %c0_i32_0 = arith.constant 0 : i32
    return %arg0, %c0_i32 : i32, i32
  }
}

</mosaic_0001>

<bundles_post_ra>
// kernel: tpu_custom_call.1
= control target key start
LH: loop header
LB: loop body
LE: loop exit
PB: predicated region body
PF: predicated region fallthrough
CT: control target
= control target key end

     0   :  { %s401_s0 = inlined_call_operand.vmem [shape: f32[1,128], index: 0, kind: input, shape index: {}]   ;;  %s402_s1 = inlined_call_operand.vmem [shape: f32[128,128], index: 1, kind: input, shape index: {}]   ;;  %s403_s2 = inlined_call_operand.vmem [shape: f32[128,32], index: 2, kind: input, shape index: {}]   ;;  %s404_s3 = inlined_call_operand.vmem [shape: f32[8,128], index: 3, kind: input, shape index: {}]   ;;  %s405_s4 = inlined_call_operand.vmem [shape: f32[8,128], index: 4, kind: input, shape index: {}]   ;;  %s406_s5 = inlined_call_operand.vmem [shape: f32[8,128], index: 5, kind: input, shape index: {}]   ;;  %s407_s6 = inlined_call_operand.<no memory space> [shape: f32[1,1], index: 6, kind: input, shape index: {}]   ;;  %s408_s7 = inlined_call_operand.hbm [shape: f32[1,32], index: 7, kind: output, shape index: {}]  }
   0x1   :  { %v12_v0 = vstv %s407_s6 }
   0x2   :  { %13 = vst [vmem:[#allocation2] sm:$0x1] %v12_v0 }
   0x3   :  { %v45_v1 = vld [vmem:[%s402_s1 + $0x78] sm:$0xff]  ;;  %v44_v2 = vld [vmem:[%s402_s1 + $0x70] sm:$0xff]  ;;  %v43_v3 = vld [vmem:[%s402_s1 + $0x68] sm:$0xff] }
   0x4   :  { %46 = vmatpush.msra.mxu0 %v45_v1  ;;  %v42_v4 = vld [vmem:[%s402_s1 + $0x60] sm:$0xff]  ;;  %v168_v5 = vld [vmem:[%s403_s2 + $0x78] sm:$0xff] }
   0x5   :  { %v41_v6 = vld [vmem:[%s402_s1 + $0x58] sm:$0xff]  ;;  %176 = vmatpush.msra.mxu1 %v168_v5 }
   0x6   :  { %47 = vmatpush.msra.mxu0 %v44_v2 }
   0x8   :  { %48 = vmatpush.msra.mxu0 %v43_v3 }
   0x9   :  { %14 = vsyncpa [#allocation4], 0  ;;  %v40_v7 = vld [vmem:[%s402_s1 + $0x50] sm:$0xff]  ;;  %v39_v8 = vld [vmem:[%s402_s1 + $0x48] sm:$0xff]  ;;  %v245_v36 = vmov 0   ;;  %s207_s22 = sshll.u32 %s408_s7, 4  ;;  %s208_s22 = int_to_ptr.hbm [resolvable:$true] %s207_s22 }
   0xa   :  { %49 = vmatpush.msra.mxu0 %v42_v4  ;;  %v38_v9 = vld [vmem:[%s402_s1 + $0x40] sm:$0xff]  ;;  %v37_v10 = vld [vmem:[%s402_s1 + $0x38] sm:$0xff]  ;;  %v36_v11 = vld [vmem:[%s402_s1 + $0x30] sm:$0xff]  ;;  %218 = vset.pattern.permute.xlu0 %v245_v36  ;;  %vm198_vm0 = vcmask 253952  }
   0xb   :  { %v35_v12 = vld [vmem:[%s402_s1 + $0x28] sm:$0xff]  ;;  %v34_v13 = vld [vmem:[%s402_s1 + $0x20] sm:$0xff]  ;;  %v33_v14 = vld [vmem:[%s402_s1 + $0x18] sm:$0xff] }
   0xc   :  { %50 = vmatpush.msra.mxu0 %v41_v6  ;;  %v32_v15 = vld [vmem:[%s402_s1 + $0x10] sm:$0xff]  ;;  %v31_v16 = vld [vmem:[%s402_s1 + $0x8] sm:$0xff]  ;;  %v30_v17 = vld [vmem:[%s402_s1] sm:$0xff] }
   0xd   :  { %v29_v18 = vld [vmem:[%s401_s0] sm:$0x1]  ;;  %v167_v19 = vld [vmem:[%s403_s2 + $0x70] sm:$0xff]  ;;  %v166_v20 = vld [vmem:[%s403_s2 + $0x68] sm:$0xff] }
   0xe   :  { %51 = vmatpush.msra.mxu0 %v40_v7  ;;  %177 = vmatpush.msra.mxu1 %v167_v19  ;;  %v165_v21 = vld [vmem:[%s403_s2 + $0x60] sm:$0xff]  ;;  %v164_v22 = vld [vmem:[%s403_s2 + $0x58] sm:$0xff]  ;;  %v163_v23 = vld [vmem:[%s403_s2 + $0x50] sm:$0xff] }
   0xf   :  { %v162_v24 = vld [vmem:[%s403_s2 + $0x48] sm:$0xff]  ;;  %v161_v25 = vld [vmem:[%s403_s2 + $0x40] sm:$0xff]  ;;  %v160_v26 = vld [vmem:[%s403_s2 + $0x38] sm:$0xff] }
  0x10   :  { %52 = vmatpush.msra.mxu0 %v39_v8  ;;  %178 = vmatpush.msra.mxu1 %v166_v20  ;;  %v159_v27 = vld [vmem:[%s403_s2 + $0x30] sm:$0xff]  ;;  %v158_v28 = vld [vmem:[%s403_s2 + $0x28] sm:$0xff]  ;;  %v157_v29 = vld [vmem:[%s403_s2 + $0x20] sm:$0xff] }
  0x11   :  { %v156_v30 = vld [vmem:[%s403_s2 + $0x18] sm:$0xff]  ;;  %v155_v31 = vld [vmem:[%s403_s2 + $0x10] sm:$0xff]  ;;  %v154_v32 = vld [vmem:[%s403_s2 + $0x8] sm:$0xff] }
  0x12   :  { %53 = vmatpush.msra.mxu0 %v38_v9  ;;  %179 = vmatpush.msra.mxu1 %v165_v21  ;;  %v153_v33 = vld [vmem:[%s403_s2] sm:$0xff] }
  0x13   :  { %v169_v34 = vld [vmem:[#allocation2] sm:$0x1] }
  0x14   :  { %54 = vmatpush.msra.mxu0 %v37_v10  ;;  %180 = vmatpush.msra.mxu1 %v164_v22  ;;  %v66_v35 = vld [vmem:[%s404_s3] sm:$0xff] }
  0x15   :  { %172 = vperm.xlu0 %218, %v169_v34   ;;  %v67_v38 = vld [vmem:[%s405_s4] sm:$0xff]  ;;  %s246_s4 = smov [#allocation3]  }
  0x16   :  { %55 = vmatpush.msra.mxu0 %v36_v11  ;;  %181 = vmatpush.msra.mxu1 %v163_v23  ;;  %v68_v8 = vld [vmem:[%s406_s5] sm:$0xff]  ;;  %s205_s5 = sshll.u32 %s246_s4, 4  ;;  %s206_s5 = int_to_ptr.vmem [resolvable:$true] %s205_s5 }
  0x18   :  { %56 = vmatpush.msra.mxu0 %v35_v12  ;;  %182 = vmatpush.msra.mxu1 %v162_v24 }
  0x1a   :  { %57 = vmatpush.msra.mxu0 %v34_v13  ;;  %183 = vmatpush.msra.mxu1 %v161_v25 }
  0x1c   :  { %58 = vmatpush.msra.mxu0 %v33_v14  ;;  %184 = vmatpush.msra.mxu1 %v160_v26 }
  0x1e   :  { %59 = vmatpush.msra.mxu0 %v32_v15  ;;  %185 = vmatpush.msra.mxu1 %v159_v27 }
  0x20   :  { %60 = vmatpush.msra.mxu0 %v31_v16  ;;  %186 = vmatpush.msra.mxu1 %v158_v28 }
  0x22   :  { %61 = vmatpush.msra.mxu0 %v30_v17  ;;  %187 = vmatpush.msra.mxu1 %v157_v29 }
  0x23   :  { %62 = vmatmul.f32.vlgmr.msra.gmra.mxu0 %v29_v18 }
  0x24   :  { %188 = vmatpush.msra.mxu1 %v156_v30 }
  0x26   :  { %189 = vmatpush.msra.mxu1 %v155_v31 }
  0x28   :  { %190 = vmatpush.msra.mxu1 %v154_v32 }
  0x2a   :  { %191 = vmatpush.msra.mxu1 %v153_v33 }
  0xa0   :  { %v63_v37 = vpop.f32.mrf.mxu0 }
  0xa1   :  { %v69_v39 = vmul.f32 %v66_v35, %v63_v37  ;;  %v76_v40 = vrot.slane %v63_v37, 7  ;;  %v87_v41 = vrot.slane %v63_v37, 6  ;;  %v98_v42 = vrot.slane %v63_v37, 5 }
  0xa2   :  { %v109_v43 = vrot.slane %v63_v37, 4  ;;  %v120_v44 = vrot.slane %v63_v37, 3  ;;  %v131_v45 = vrot.slane %v63_v37, 2  ;;  %v142_v46 = vrot.slane %v63_v37, 1  ;;  %v173_v37 = vpop.permute.xlu0 %172 }
  0xa3   :  { %v70_v47 = vadd.f32 %v69_v39, %v67_v38  ;;  %v78_v48 = vmul.f32 %v76_v40, %v66_v35  ;;  %v89_v49 = vmul.f32 %v87_v41, %v66_v35  ;;  %v100_v50 = vmul.f32 %v98_v42, %v66_v35 }
  0xa4   :  { %v111_v51 = vmul.f32 %v109_v43, %v66_v35  ;;  %v122_v52 = vmul.f32 %v120_v44, %v66_v35  ;;  %v133_v53 = vmul.f32 %v131_v45, %v66_v35  ;;  %v144_v54 = vmul.f32 %v142_v46, %v66_v35 }
  0xa5   :  { %v71_v55 = vmax.f32 %v70_v47, 0.0  ;;  %v79_v56 = vadd.f32 %v78_v48, %v67_v38  ;;  %v90_v57 = vadd.f32 %v89_v49, %v67_v38  ;;  %v101_v58 = vadd.f32 %v100_v50, %v67_v38 }
  0xa6   :  { %v112_v59 = vadd.f32 %v111_v51, %v67_v38  ;;  %v123_v60 = vadd.f32 %v122_v52, %v67_v38  ;;  %v134_v0 = vadd.f32 %v133_v53, %v67_v38  ;;  %v145_v3 = vadd.f32 %v144_v54, %v67_v38 }
  0xa7   :  { %v80_v61 = vmax.f32 %v79_v56, 0.0  ;;  %v91_v62 = vmax.f32 %v90_v57, 0.0  ;;  %v102_v63 = vmax.f32 %v101_v58, 0.0  ;;  %v72_v1 = vmin.f32 %v71_v55, 1.0 }
  0xa8   :  { %v113_v2 = vmax.f32 %v112_v59, 0.0  ;;  %v124_v7 = vmax.f32 %v123_v60, 0.0  ;;  %v135_v12 = vmax.f32 %v134_v0, 0.0  ;;  %v146_v13 = vmax.f32 %v145_v3, 0.0 }
  0xa9   :  { %v81_v4 = vmin.f32 %v80_v61, 1.0  ;;  %v92_v5 = vmin.f32 %v91_v62, 1.0  ;;  %v103_v6 = vmin.f32 %v102_v63, 1.0  ;;  %v73_v14 = vmul.f32 %v72_v1, %v68_v8 }
  0xaa   :  { %v114_v11 = vmin.f32 %v113_v2, 1.0  ;;  %v125_v17 = vmin.f32 %v124_v7, 1.0  ;;  %v136_v21 = vmin.f32 %v135_v12, 1.0  ;;  %v147_v25 = vmin.f32 %v146_v13, 1.0 }
  0xab   :  { %v82_v9 = vmul.f32 %v81_v4, %v68_v8  ;;  %v93_v10 = vmul.f32 %v92_v5, %v68_v8  ;;  %v104_v16 = vmul.f32 %v103_v6, %v68_v8  ;;  %v175_v38 = vperm.slane %v173_v37, 0 }
  0xac   :  { %v115_v20 = vmul.f32 %v114_v11, %v68_v8  ;;  %v126_v24 = vmul.f32 %v125_v17, %v68_v8  ;;  %v137_v28 = vmul.f32 %v136_v21, %v68_v8  ;;  %v148_v31 = vmul.f32 %v147_v25, %v68_v8 }
  0xad   :  { %v84_v15 = vrot.slane %v82_v9, 1  ;;  %v95_v19 = vrot.slane %v93_v10, 2  ;;  %v106_v23 = vrot.slane %v104_v16, 3 }
  0xae   :  { %v117_v27 = vrot.slane %v115_v20, 4  ;;  %v128_v30 = vrot.slane %v126_v24, 5  ;;  %v139_v33 = vrot.slane %v137_v28, 6  ;;  %v150_v35 = vrot.slane %v148_v31, 7 }
  0xaf   :  { %v86_v18 = vadd.f32 %v84_v15, %v73_v14 }
  0xb1   :  { %v97_v22 = vadd.f32 %v95_v19, %v86_v18 }
  0xb3   :  { %v108_v26 = vadd.f32 %v106_v23, %v97_v22 }
  0xb5   :  { %v119_v29 = vadd.f32 %v117_v27, %v108_v26 }
  0xb7   :  { %v130_v32 = vadd.f32 %v128_v30, %v119_v29 }
  0xb9   :  { %v141_v34 = vadd.f32 %v139_v33, %v130_v32 }
  0xbb   :  { %v152_v36 = vadd.f32 %v150_v35, %v141_v34 }
  0xbd   :  { %192 = vmatmul.f32.vlgmr.msra.gmra.mxu1 %v152_v36 }
 0x13a   :  { %v193_v39 = vpop.f32.mrf.mxu1 }
 0x13b   :  { %v194_v40 = vadd.f32 %v193_v39, %v175_v38 }
 0x13d   :  { %v196_v41 = vmax.f32 %v194_v40, 0.0 }
 0x13f   :  { %v197_v42 = vmin.f32 %v196_v41, 4.0 }
 0x141   :  { %199 = vst.msk [vmem:[#allocation3] sm:$0x1] %vm198_vm0, %v197_v42 }
 0x142   :  { %210 = dma.vmem_to_hbm [thread:$0]  %s206_s5, 16, %s208_s22, [#allocation4]  }
 0x143   :  { %243 = dma.done.wait [#allocation4], 16  }
 0x144   :  { %244 = vsyncadd [#allocation4], 4294967280 }
 0x145   :  { %215 = vsyncpa [#allocation4], 1 }

</bundles_post_ra>
